<compile_context>
chip_gen: v6e
topology: v6e:2x2x1
jax: 0.10.0
libtpu: 0.0.40
codegen_flags: <defaults>
</compile_context>

<pallas_src>
import jax
import jax.numpy as jnp
from jax.experimental import pallas as pl
from jax.experimental.pallas import tpu as pltpu

LANE = 128
SUBLANE = 8


def _round_up(n, m):
    return ((n + m - 1) // m) * m


def mlp_kernel(x_ref, w1_ref, b1_ref, w2_ref, b2_ref, w3_ref, b3_ref, o_ref):
    def sigmoid(z):
        # 1 / (1 + exp(-z)): exp + approx reciprocal both run on the EUP.
        return pl.reciprocal(1.0 + jnp.exp(-z), approx=True)

    x = x_ref[...].astype(jnp.bfloat16)

    # Layer 1: Linear + Sigmoid (bf16 MXU operands, f32 accumulate)
    h1 = jnp.dot(x, w1_ref[...].astype(jnp.bfloat16),
                 preferred_element_type=jnp.float32) + b1_ref[...]
    h1 = sigmoid(h1)

    # Layer 2: Linear + Sigmoid
    h2 = jnp.dot(h1.astype(jnp.bfloat16), w2_ref[...].astype(jnp.bfloat16),
                 preferred_element_type=jnp.float32) + b2_ref[...]
    h2 = sigmoid(h2)

    # Layer 3: Linear (no activation, matches the module)
    y = jnp.dot(h2.astype(jnp.bfloat16), w3_ref[...].astype(jnp.bfloat16),
                preferred_element_type=jnp.float32) + b3_ref[...]
    o_ref[...] = y.astype(o_ref.dtype)


def mlp_forward(x, params, *, block_batch=512):
    """x: (B, input_size) f32; params weights stored as (in, out) like x @ W + b."""
    w1, b1, w2, b2, w3, b3 = params
    B, in_size = x.shape
    h1_size, h2_size, out_size = w1.shape[1], w2.shape[1], w3.shape[1]

    # Pad feature dims to 128 lanes (lane-dense MXU/VPU/store), batch to tile.
    in_p = _round_up(in_size, LANE)
    h1_p = _round_up(h1_size, LANE)
    h2_p = _round_up(h2_size, LANE)
    out_p = _round_up(out_size, LANE)

    tb = min(block_batch, _round_up(B, SUBLANE))
    b_p = _round_up(B, tb)

    pad2 = lambda a, r, c: jnp.pad(a, ((0, r - a.shape[0]), (0, c - a.shape[1])))
    x_p = pad2(x, b_p, in_p)
    w1_p, b1_p = pad2(w1, in_p, h1_p), pad2(b1, 1, h1_p)
    w2_p, b2_p = pad2(w2, h1_p, h2_p), pad2(b2, 1, h2_p)
    w3_p, b3_p = pad2(w3, h2_p, out_p), pad2(b3, 1, out_p)

    resident = lambda shape: pl.BlockSpec(shape, lambda i: (0, 0))

    out = pl.pallas_call(
        mlp_kernel,
        out_shape=jax.ShapeDtypeStruct((b_p, out_p), jnp.float32),
        grid_spec=pl.GridSpec(
            grid=(b_p // tb,),
            in_specs=[
                pl.BlockSpec((tb, in_p), lambda i: (i, 0)),   # streamed x tiles
                resident(w1_p.shape), resident(b1_p.shape),   # VMEM-resident weights
                resident(w2_p.shape), resident(b2_p.shape),
                resident(w3_p.shape), resident(b3_p.shape),
            ],
            out_specs=pl.BlockSpec((tb, out_p), lambda i: (i, 0)),
        ),
        compiler_params=pltpu.CompilerParams(
            dimension_semantics=("parallel",),
            vmem_limit_bytes=64 * 1024 * 1024,
        ),
    )(x_p, w1_p, b1_p, w2_p, b2_p, w3_p, b3_p)

    return out[:B, :out_size]


def init_params(key, input_size, h1, h2, output_size):
    """Deterministic parameter init (xavier-normal-ish), weights as (in, out)."""
    ks = jax.random.split(key, 6)

    def xavier(k, fan_in, fan_out):
        std = jnp.sqrt(2.0 / (fan_in + fan_out))
        return jax.random.normal(k, (fan_in, fan_out), jnp.float32) * std

    w1 = xavier(ks[0], input_size, h1)
    b1 = jax.random.normal(ks[1], (1, h1), jnp.float32) * 0.01
    w2 = xavier(ks[2], h1, h2)
    b2 = jax.random.normal(ks[3], (1, h2), jnp.float32) * 0.01
    w3 = xavier(ks[4], h2, output_size)
    b3 = jax.random.normal(ks[5], (1, output_size), jnp.float32) * 0.01
    return w1, b1, w2, b2, w3, b3


if __name__ == "__main__":
    key = jax.random.PRNGKey(0)
    k_x, k_p = jax.random.split(key)

    # Small shapes consistent with the module's forward: (batch, input_size)
    batch, input_size, hidden_size_1, hidden_size_2, output_size = 8, 16, 32, 32, 8

    x = jax.random.normal(k_x, (batch, input_size), jnp.float32)
    params = init_params(k_p, input_size, hidden_size_1, hidden_size_2, output_size)

    y = mlp_forward(x, params)
    jax.block_until_ready(y)

    # Cross-check against a plain f32 JAX reference of the same math.
    # (Kernel uses bf16 MXU operands + approx reciprocal -> relaxed tolerance.)
    w1, b1, w2, b2, w3, b3 = params
    ref = jax.nn.sigmoid(x @ w1 + b1)
    ref = jax.nn.sigmoid(ref @ w2 + b2)
    ref = ref @ w3 + b3
    assert y.shape == ref.shape, f"shape mismatch {y.shape} vs {ref.shape}"
    assert jnp.allclose(y, ref, atol=2e-2, rtol=2e-2), (
        f"mismatch vs reference, max abs diff = {jnp.max(jnp.abs(y - ref))}")

    print("KERNEL_OK")
</pallas_src>

<mosaic_0001>
module attributes {stable_mosaic.version = 11 : i64} {
  func.func @mlp_kernel(%arg0: i32, %arg1: memref<8x128xf32, #tpu.memory_space<vmem>>, %arg2: memref<128x128xf32, #tpu.memory_space<vmem>>, %arg3: memref<1x128xf32, #tpu.memory_space<vmem>>, %arg4: memref<128x128xf32, #tpu.memory_space<vmem>>, %arg5: memref<1x128xf32, #tpu.memory_space<vmem>>, %arg6: memref<128x128xf32, #tpu.memory_space<vmem>>, %arg7: memref<1x128xf32, #tpu.memory_space<vmem>>, %arg8: memref<8x128xf32, #tpu.memory_space<vmem>>) attributes {dimension_semantics = [#tpu.dimension_semantics<parallel>], iteration_bounds = array<i64: 1>, scalar_prefetch = 0 : i64, scratch_operands = 0 : i64, tpu.core_type = #tpu.core_type<tc>, window_params = [{transform_indices = @transform_0, window_bounds = array<i64: 8, 128>}, {pipeline_mode = #tpu.pipeline_mode<synchronous>, transform_indices = @transform_1, window_bounds = array<i64: 128, 128>}, {pipeline_mode = #tpu.pipeline_mode<synchronous>, transform_indices = @transform_2, window_bounds = array<i64: 1, 128>}, {pipeline_mode = #tpu.pipeline_mode<synchronous>, transform_indices = @transform_3, window_bounds = array<i64: 128, 128>}, {pipeline_mode = #tpu.pipeline_mode<synchronous>, transform_indices = @transform_4, window_bounds = array<i64: 1, 128>}, {pipeline_mode = #tpu.pipeline_mode<synchronous>, transform_indices = @transform_5, window_bounds = array<i64: 128, 128>}, {pipeline_mode = #tpu.pipeline_mode<synchronous>, transform_indices = @transform_6, window_bounds = array<i64: 1, 128>}, {transform_indices = @transform_7, window_bounds = array<i64: 8, 128>}]} {
    %c0 = arith.constant 0 : index
    %c0_0 = arith.constant 0 : index
    %0 = vector.load %arg1[%c0, %c0_0] : memref<8x128xf32, #tpu.memory_space<vmem>>, vector<8x128xf32>
    %1 = arith.truncf %0 : vector<8x128xf32> to vector<8x128xbf16>
    %c0_1 = arith.constant 0 : index
    %c0_2 = arith.constant 0 : index
    %2 = vector.load %arg2[%c0_1, %c0_2] : memref<128x128xf32, #tpu.memory_space<vmem>>, vector<128x128xf32>
    %3 = arith.truncf %2 : vector<128x128xf32> to vector<128x128xbf16>
    %cst = arith.constant dense<0.000000e+00> : vector<8x128xf32>
    %4 = tpu.matmul %1, %3, %cst {dimension_numbers = #tpu.dot_dimension_numbers<[1], [0], [0], [1], [0, 0, 1, 1], [], []>} : vector<8x128xbf16>, vector<128x128xbf16>, vector<8x128xf32> -> vector<8x128xf32>
    %c0_3 = arith.constant 0 : index
    %c0_4 = arith.constant 0 : index
    %5 = vector.load %arg3[%c0_3, %c0_4] : memref<1x128xf32, #tpu.memory_space<vmem>>, vector<1x128xf32>
    %6 = vector.broadcast %5 : vector<1x128xf32> to vector<8x128xf32>
    %7 = arith.addf %4, %6 : vector<8x128xf32>
    %cst_5 = arith.constant 0.000000e+00 : f32
    %8 = vector.broadcast %cst_5 : f32 to vector<8x128xf32>
    %9 = arith.subf %8, %7 : vector<8x128xf32>
    %10 = math.exp %9 : vector<8x128xf32>
    %cst_6 = arith.constant 1.000000e+00 : f32
    %11 = vector.broadcast %cst_6 : f32 to vector<8x128xf32>
    %12 = arith.addf %11, %10 : vector<8x128xf32>
    %13 = tpu.reciprocal %12 {approx = true} : vector<8x128xf32> -> vector<8x128xf32>
    %14 = arith.truncf %13 : vector<8x128xf32> to vector<8x128xbf16>
    %c0_7 = arith.constant 0 : index
    %c0_8 = arith.constant 0 : index
    %15 = vector.load %arg4[%c0_7, %c0_8] : memref<128x128xf32, #tpu.memory_space<vmem>>, vector<128x128xf32>
    %16 = arith.truncf %15 : vector<128x128xf32> to vector<128x128xbf16>
    %cst_9 = arith.constant dense<0.000000e+00> : vector<8x128xf32>
    %17 = tpu.matmul %14, %16, %cst_9 {dimension_numbers = #tpu.dot_dimension_numbers<[1], [0], [0], [1], [0, 0, 1, 1], [], []>} : vector<8x128xbf16>, vector<128x128xbf16>, vector<8x128xf32> -> vector<8x128xf32>
    %c0_10 = arith.constant 0 : index
    %c0_11 = arith.constant 0 : index
    %18 = vector.load %arg5[%c0_10, %c0_11] : memref<1x128xf32, #tpu.memory_space<vmem>>, vector<1x128xf32>
    %19 = vector.broadcast %18 : vector<1x128xf32> to vector<8x128xf32>
    %20 = arith.addf %17, %19 : vector<8x128xf32>
    %cst_12 = arith.constant 0.000000e+00 : f32
    %21 = vector.broadcast %cst_12 : f32 to vector<8x128xf32>
    %22 = arith.subf %21, %20 : vector<8x128xf32>
    %23 = math.exp %22 : vector<8x128xf32>
    %cst_13 = arith.constant 1.000000e+00 : f32
    %24 = vector.broadcast %cst_13 : f32 to vector<8x128xf32>
    %25 = arith.addf %24, %23 : vector<8x128xf32>
    %26 = tpu.reciprocal %25 {approx = true} : vector<8x128xf32> -> vector<8x128xf32>
    %27 = arith.truncf %26 : vector<8x128xf32> to vector<8x128xbf16>
    %c0_14 = arith.constant 0 : index
    %c0_15 = arith.constant 0 : index
    %28 = vector.load %arg6[%c0_14, %c0_15] : memref<128x128xf32, #tpu.memory_space<vmem>>, vector<128x128xf32>
    %29 = arith.truncf %28 : vector<128x128xf32> to vector<128x128xbf16>
    %cst_16 = arith.constant dense<0.000000e+00> : vector<8x128xf32>
    %30 = tpu.matmul %27, %29, %cst_16 {dimension_numbers = #tpu.dot_dimension_numbers<[1], [0], [0], [1], [0, 0, 1, 1], [], []>} : vector<8x128xbf16>, vector<128x128xbf16>, vector<8x128xf32> -> vector<8x128xf32>
    %c0_17 = arith.constant 0 : index
    %c0_18 = arith.constant 0 : index
    %31 = vector.load %arg7[%c0_17, %c0_18] : memref<1x128xf32, #tpu.memory_space<vmem>>, vector<1x128xf32>
    %32 = vector.broadcast %31 : vector<1x128xf32> to vector<8x128xf32>
    %33 = arith.addf %30, %32 : vector<8x128xf32>
    %c0_19 = arith.constant 0 : index
    %c0_20 = arith.constant 0 : index
    %34 = vector.load %arg8[%c0_19, %c0_20] : memref<8x128xf32, #tpu.memory_space<vmem>>, vector<8x128xf32>
    tpu.vector_store %arg8[%c0_19, %c0_20], %33 {strides = array<i32>} : memref<8x128xf32, #tpu.memory_space<vmem>>, vector<8x128xf32>,
    return
  }
  func.func @transform_0(%arg0: i32) -> (i32, i32) {
    %c0_i32 = arith.constant 0 : i32
    %c0_i32_0 = arith.constant 0 : i32
    return %arg0, %c0_i32 : i32, i32
  }
  func.func @transform_1(%arg0: i32) -> (i32, i32) {
    %c0_i32 = arith.constant 0 : i32
    %c0_i32_0 = arith.constant 0 : i32
    %c0_i32_1 = arith.constant 0 : i32
    return %c0_i32, %c0_i32_0 : i32, i32
  }
  func.func @transform_2(%arg0: i32) -> (i32, i32) {
    %c0_i32 = arith.constant 0 : i32
    %c0_i32_0 = arith.constant 0 : i32
    %c0_i32_1 = arith.constant 0 : i32
    return %c0_i32, %c0_i32_0 : i32, i32
  }
  func.func @transform_3(%arg0: i32) -> (i32, i32) {
    %c0_i32 = arith.constant 0 : i32
    %c0_i32_0 = arith.constant 0 : i32
    %c0_i32_1 = arith.constant 0 : i32
    return %c0_i32, %c0_i32_0 : i32, i32
  }
  func.func @transform_4(%arg0: i32) -> (i32, i32) {
    %c0_i32 = arith.constant 0 : i32
    %c0_i32_0 = arith.constant 0 : i32
    %c0_i32_1 = arith.constant 0 : i32
    return %c0_i32, %c0_i32_0 : i32, i32
  }
  func.func @transform_5(%arg0: i32) -> (i32, i32) {
    %c0_i32 = arith.constant 0 : i32
    %c0_i32_0 = arith.constant 0 : i32
    %c0_i32_1 = arith.constant 0 : i32
    return %c0_i32, %c0_i32_0 : i32, i32
  }
  func.func @transform_6(%arg0: i32) -> (i32, i32) {
    %c0_i32 = arith.constant 0 : i32
    %c0_i32_0 = arith.constant 0 : i32
    %c0_i32_1 = arith.constant 0 : i32
    return %c0_i32, %c0_i32_0 : i32, i32
  }
  func.func @transform_7(%arg0: i32) -> (i32, i32) {
    %c0_i32 = arith.constant 0 : i32
    %c0_i32_0 = arith.constant 0 : i32
    return %arg0, %c0_i32 : i32, i32
  }
}

</mosaic_0001>

<bundles_post_ra>
// kernel: tpu_custom_call.1
= control target key start
LH: loop header
LB: loop body
LE: loop exit
PB: predicated region body
PF: predicated region fallthrough
CT: control target
= control target key end

     0   :  { %12 = vsyncpa [#allocation3], 0  ;;  %s653_s0 = inlined_call_operand.hbm [shape: f32[8,128], index: 0, kind: input, shape index: {}]   ;;  %s654_s1 = inlined_call_operand.hbm [shape: f32[128,128], index: 1, kind: input, shape index: {}]   ;;  %s655_s2 = inlined_call_operand.vmem [shape: f32[1,128], index: 2, kind: input, shape index: {}]   ;;  %s656_s3 = inlined_call_operand.hbm [shape: f32[128,128], index: 3, kind: input, shape index: {}]   ;;  %s657_s4 = inlined_call_operand.vmem [shape: f32[1,128], index: 4, kind: input, shape index: {}]   ;;  %s658_s5 = inlined_call_operand.hbm [shape: f32[128,128], index: 5, kind: input, shape index: {}]   ;;  %s659_s6 = inlined_call_operand.vmem [shape: f32[1,128], index: 6, kind: input, shape index: {}]   ;;  %s660_s7 = inlined_call_operand.hbm [shape: f32[8,128], index: 7, kind: output, shape index: {}]  }
   0x1   :  { %13 = vsyncpa [#allocation6], 0 }
   0x2   :  { %14 = vsyncpa [#allocation9], 0 }
   0x3   :  { %15 = vsyncpa [#allocation4], 0  ;;  %s541_s24 = smov [#allocation5]  }
   0x4   :  { %s31_s25 = sshll.u32 %s541_s24, 4  ;;  %s32_s25 = int_to_ptr.vmem [resolvable:$true] %s31_s25 }
   0x5   :  { %s441_s26 = scalar_lea.vmem %s32_s25, 2048  ;;  %p446_p1 = scmp.lt.s32.totalorder %s32_s25, %s32_s25 }
   0x6   :  { %p442_p0 = scmp.ne.s32.totalorder %s32_s25, %s441_s26  ;;  %p447_p2 = scmp.lt.s32.totalorder %s441_s26, %s441_s26 }
   0x8   :  { %p448_p3 = por %p447_p2, %p446_p1 }
   0xa   :  { %p449_p4 = pnand %p448_p3, %p442_p0 }
   0xc   :  { %452 = shalt.err (!%p449_p4)
}
   0xd   :  { %s542_s27 = smov 128   ;;  %s543_s28 = smov 8  }
   0xe   :  { %37 = dma.hbm_to_vmem [thread:$0]  %s654_s1, 2048, %s32_s25, [#allocation6], %s542_s27, %s542_s27, %s543_s28  }
   0xf   :  { %s544_s8 = smov [#allocation2]   ;;  %s545_s10 = smov [#allocation7]  }
  0x10   :  { %s22_s9 = sshll.u32 %s544_s8, 4  ;;  %s45_s11 = sshll.u32 %s545_s10, 4  ;;  %s23_s9 = int_to_ptr.vmem [resolvable:$true] %s22_s9  ;;  %s46_s11 = int_to_ptr.vmem [resolvable:$true] %s45_s11 }
  0x11   :  { %s461_s12 = scalar_lea.vmem %s23_s9, 128  ;;  %p466_p6 = scmp.lt.s32.totalorder %s23_s9, %s23_s9 }
  0x12   :  { %p462_p5 = scmp.ne.s32.totalorder %s23_s9, %s461_s12  ;;  %p467_p7 = scmp.lt.s32.totalorder %s461_s12, %s461_s12 }
  0x14   :  { %p468_p8 = por %p467_p7, %p466_p6 }
  0x16   :  { %p469_p9 = pnand %p468_p8, %p462_p5 }
  0x18   :  { %472 = shalt.err (!%p469_p9)
}
  0x19   :  { %25 = dma.hbm_to_vmem [thread:$0]  %s653_s0, 128, %s23_s9, [#allocation3]  }
  0x1a   :  { %s481_s15 = scalar_lea.vmem %s46_s11, 2048  ;;  %p486_p11 = scmp.lt.s32.totalorder %s46_s11, %s46_s11 }
  0x1b   :  { %p482_p10 = scmp.ne.s32.totalorder %s46_s11, %s481_s15  ;;  %p487_p12 = scmp.lt.s32.totalorder %s481_s15, %s481_s15 }
  0x1d   :  { %p488_p13 = por %p487_p12, %p486_p11 }
  0x1f   :  { %p489_p0 = pnand %p488_p13, %p482_p10 }
  0x21   :  { %492 = shalt.err (!%p489_p0)
}
  0x22   :  { %51 = dma.hbm_to_vmem [thread:$0]  %s656_s3, 2048, %s46_s11, [#allocation6], %s542_s27, %s542_s27, %s543_s28  }
  0x23   :  { %s546_s17 = smov [#allocation8]  }
  0x24   :  { %s59_s18 = sshll.u32 %s546_s17, 4  ;;  %s60_s18 = int_to_ptr.vmem [resolvable:$true] %s59_s18 }
  0x25   :  { %s501_s19 = scalar_lea.vmem %s60_s18, 2048  ;;  %p506_p2 = scmp.lt.s32.totalorder %s60_s18, %s60_s18 }
  0x26   :  { %p502_p1 = scmp.ne.s32.totalorder %s60_s18, %s501_s19  ;;  %p507_p3 = scmp.lt.s32.totalorder %s501_s19, %s501_s19 }
  0x28   :  { %p508_p4 = por %p507_p3, %p506_p2 }
  0x2a   :  { %p509_p5 = pnand %p508_p4, %p502_p1 }
  0x2c   :  { %512 = shalt.err (!%p509_p5)
}
  0x2d   :  { %65 = dma.hbm_to_vmem [thread:$0]  %s658_s5, 2048, %s60_s18, [#allocation9], %s542_s27, %s542_s27, %s543_s28  }
  0x2e   :  { %533 = dma.done.wait [#allocation3], 128  }
  0x2f   :  { %534 = vsyncadd [#allocation3], 4294967168 }
  0x30   :  { %535 = dma.done.wait [#allocation6], 4096  }
  0x31   :  { %536 = vsyncadd [#allocation6], 4294963200 }
  0x32   :  { %537 = dma.done.wait [#allocation9], 2048  }
  0x33   :  { %538 = vsyncadd [#allocation9], 4294965248  ;;  %v547_v0 = vmov 0.0   ;;  %vm548_vm0 = vmmov 0   ;;  %v97_v1 = vld [vmem:[#allocation5 + $0x70] sm:$0xff]  ;;  %v98_v2 = vld [vmem:[#allocation5 + $0x78] sm:$0xff] }
  0x34   :  { %356 = vmatprep.subr.bf16.mxu0 %v547_v0  ;;  %372 = vmatprep.mubr.msk.bf16.mxu0 %vm548_vm0, %v547_v0  ;;  %v95_v3 = vld [vmem:[#allocation5 + $0x60] sm:$0xff]  ;;  %v106_v4 = vpack.c.bf16 %v98_v2, %v97_v1  ;;  %v96_v5 = vld [vmem:[#allocation5 + $0x68] sm:$0xff]  ;;  %v93_v7 = vld [vmem:[#allocation5 + $0x50] sm:$0xff]  ;;  %s549_s24 = smov [#allocation10]  }
  0x35   :  { %376 = vmatprep.subr.bf16.mxu1 %v547_v0  ;;  %392 = vmatprep.mubr.msk.bf16.mxu1 %vm548_vm0, %v547_v0  ;;  %v105_v6 = vpack.c.bf16 %v96_v5, %v95_v3  ;;  %v94_v8 = vld [vmem:[#allocation5 + $0x58] sm:$0xff]  ;;  %v91_v10 = vld [vmem:[#allocation5 + $0x40] sm:$0xff]  ;;  %v92_v11 = vld [vmem:[#allocation5 + $0x48] sm:$0xff] }
  0x36   :  { %357 = vmatpush3.bf16.msra.mxu0 %v106_v4  ;;  %v104_v9 = vpack.c.bf16 %v94_v8, %v93_v7  ;;  %v103_v12 = vpack.c.bf16 %v92_v11, %v91_v10  ;;  %v89_v13 = vld [vmem:[#allocation5 + $0x30] sm:$0xff]  ;;  %v90_v14 = vld [vmem:[#allocation5 + $0x38] sm:$0xff]  ;;  %v87_v16 = vld [vmem:[#allocation5 + $0x20] sm:$0xff] }
  0x37   :  { %358 = vmatprep.subr.bf16.mxu0 %v547_v0  ;;  %v102_v15 = vpack.c.bf16 %v90_v14, %v89_v13  ;;  %v88_v17 = vld [vmem:[#allocation5 + $0x28] sm:$0xff]  ;;  %v85_v19 = vld [vmem:[#allocation5 + $0x10] sm:$0xff]  ;;  %v86_v20 = vld [vmem:[#allocation5 + $0x18] sm:$0xff] }
  0x38   :  { %v101_v18 = vpack.c.bf16 %v88_v17, %v87_v16  ;;  %v100_v21 = vpack.c.bf16 %v86_v20, %v85_v19  ;;  %v83_v22 = vld [vmem:[#allocation5] sm:$0xff]  ;;  %v84_v23 = vld [vmem:[#allocation5 + $0x8] sm:$0xff]  ;;  %v81_v25 = vld [vmem:[#allocation2] sm:$0xff] }
  0x39   :  { %v99_v24 = vpack.c.bf16 %v84_v23, %v83_v22  ;;  %v82_v26 = vpack.c.bf16 %v81_v25, %v81_v25  ;;  %v174_v27 = vld [vmem:[#allocation7 + $0x70] sm:$0xff]  ;;  %v175_v28 = vld [vmem:[#allocation7 + $0x78] sm:$0xff]  ;;  %v172_v30 = vld [vmem:[#allocation7 + $0x60] sm:$0xff] }
  0x3a   :  { %359 = vmatpush3.bf16.msra.mxu0 %v105_v6  ;;  %v183_v29 = vpack.c.bf16 %v175_v28, %v174_v27  ;;  %v173_v31 = vld [vmem:[#allocation7 + $0x68] sm:$0xff]  ;;  %v170_v33 = vld [vmem:[#allocation7 + $0x50] sm:$0xff]  ;;  %v171_v34 = vld [vmem:[#allocation7 + $0x58] sm:$0xff] }
  0x3b   :  { %360 = vmatprep.subr.bf16.mxu0 %v547_v0  ;;  %v182_v32 = vpack.c.bf16 %v173_v31, %v172_v30  ;;  %v181_v35 = vpack.c.bf16 %v171_v34, %v170_v33  ;;  %v168_v36 = vld [vmem:[#allocation7 + $0x40] sm:$0xff]  ;;  %v169_v37 = vld [vmem:[#allocation7 + $0x48] sm:$0xff]  ;;  %v166_v39 = vld [vmem:[#allocation7 + $0x30] sm:$0xff] }
  0x3c   :  { %377 = vmatpush3.bf16.msra.mxu1 %v183_v29  ;;  %v180_v38 = vpack.c.bf16 %v169_v37, %v168_v36  ;;  %v167_v40 = vld [vmem:[#allocation7 + $0x38] sm:$0xff]  ;;  %v164_v42 = vld [vmem:[#allocation7 + $0x20] sm:$0xff]  ;;  %v165_v43 = vld [vmem:[#allocation7 + $0x28] sm:$0xff] }
  0x3d   :  { %378 = vmatprep.subr.bf16.mxu1 %v547_v0  ;;  %v179_v41 = vpack.c.bf16 %v167_v40, %v166_v39  ;;  %v178_v44 = vpack.c.bf16 %v165_v43, %v164_v42  ;;  %v162_v45 = vld [vmem:[#allocation7 + $0x10] sm:$0xff]  ;;  %v163_v46 = vld [vmem:[#allocation7 + $0x18] sm:$0xff]  ;;  %v160_v48 = vld [vmem:[#allocation7] sm:$0xff] }
  0x3e   :  { %361 = vmatpush3.bf16.msra.mxu0 %v104_v9  ;;  %v177_v47 = vpack.c.bf16 %v163_v46, %v162_v45  ;;  %v161_v49 = vld [vmem:[#allocation7 + $0x8] sm:$0xff]  ;;  %v326_v51 = vld [vmem:[%s655_s2] ss:$0 sm:$0xff]  ;;  %v251_v63 = vld [vmem:[#allocation8 + $0x70] sm:$0xff] }
  0x3f   :  { %362 = vmatprep.subr.bf16.mxu0 %v547_v0  ;;  %v176_v50 = vpack.c.bf16 %v161_v49, %v160_v48  ;;  %v252_v1 = vld [vmem:[#allocation8 + $0x78] sm:$0xff]  ;;  %v249_v3 = vld [vmem:[#allocation8 + $0x60] sm:$0xff]  ;;  %v250_v4 = vld [vmem:[#allocation8 + $0x68] sm:$0xff] }
  0x40   :  { %379 = vmatpush3.bf16.msra.mxu1 %v182_v32  ;;  %v260_v2 = vpack.c.bf16 %v252_v1, %v251_v63  ;;  %v259_v5 = vpack.c.bf16 %v250_v4, %v249_v3  ;;  %v247_v6 = vld [vmem:[#allocation8 + $0x50] sm:$0xff]  ;;  %v248_v7 = vld [vmem:[#allocation8 + $0x58] sm:$0xff]  ;;  %v245_v9 = vld [vmem:[#allocation8 + $0x40] sm:$0xff] }
  0x41   :  { %380 = vmatprep.subr.bf16.mxu1 %v547_v0  ;;  %v258_v8 = vpack.c.bf16 %v248_v7, %v247_v6  ;;  %v246_v10 = vld [vmem:[#allocation8 + $0x48] sm:$0xff]  ;;  %v244_v13 = vld [vmem:[#allocation8 + $0x38] sm:$0xff] }
  0x42   :  { %363 = vmatpush3.bf16.msra.mxu0 %v103_v12  ;;  %v257_v11 = vpack.c.bf16 %v246_v10, %v245_v9  ;;  %v243_v12 = vld [vmem:[#allocation8 + $0x30] sm:$0xff]  ;;  %v242_v16 = vld [vmem:[#allocation8 + $0x28] sm:$0xff]  ;;  %v240_v19 = vld [vmem:[#allocation8 + $0x18] sm:$0xff] }
  0x43   :  { %364 = vmatprep.subr.bf16.mxu0 %v547_v0  ;;  %v256_v14 = vpack.c.bf16 %v244_v13, %v243_v12  ;;  %v238_v22 = vld [vmem:[#allocation8 + $0x8] sm:$0xff] }
  0x44   :  { %381 = vmatpush3.bf16.msra.mxu1 %v181_v35 }
  0x45   :  { %382 = vmatprep.subr.bf16.mxu1 %v547_v0 }
  0x46   :  { %365 = vmatpush3.bf16.msra.mxu0 %v102_v15  ;;  %v241_v15 = vld [vmem:[#allocation8 + $0x20] sm:$0xff] }
  0x47   :  { %366 = vmatprep.subr.bf16.mxu0 %v547_v0  ;;  %v255_v17 = vpack.c.bf16 %v242_v16, %v241_v15 }
  0x48   :  { %383 = vmatpush3.bf16.msra.mxu1 %v180_v38 }
  0x49   :  { %384 = vmatprep.subr.bf16.mxu1 %v547_v0 }
  0x4a   :  { %367 = vmatpush3.bf16.msra.mxu0 %v101_v18  ;;  %v239_v18 = vld [vmem:[#allocation8 + $0x10] sm:$0xff] }
  0x4b   :  { %368 = vmatprep.subr.bf16.mxu0 %v547_v0  ;;  %v254_v20 = vpack.c.bf16 %v240_v19, %v239_v18 }
  0x4c   :  { %385 = vmatpush3.bf16.msra.mxu1 %v179_v41 }
  0x4d   :  { %386 = vmatprep.subr.bf16.mxu1 %v547_v0 }
  0x4e   :  { %369 = vmatpush3.bf16.msra.mxu0 %v100_v21  ;;  %v237_v21 = vld [vmem:[#allocation8] sm:$0xff] }
  0x4f   :  { %370 = vmatprep.subr.bf16.mxu0 %v547_v0  ;;  %v253_v23 = vpack.c.bf16 %v238_v22, %v237_v21 }
  0x50   :  { %387 = vmatpush3.bf16.msra.mxu1 %v178_v44 }
  0x51   :  { %388 = vmatprep.subr.bf16.mxu1 %v547_v0 }
  0x52   :  { %371 = vmatpush3.bf16.msra.mxu0 %v99_v24  ;;  %v327_v24 = vld [vmem:[%s657_s4] ss:$0 sm:$0xff]  ;;  %s315_s4 = sshll.u32 %s549_s24, 4  ;;  %s316_s4 = int_to_ptr.vmem [resolvable:$true] %s315_s4 }
  0x53   :  { %396 = vmatprep.subr.bf16.mxu0 %v547_v0  ;;  %s513_s25 = scalar_lea.vmem %s316_s4, 128  ;;  %p518_p7 = scmp.lt.s32.totalorder %s316_s4, %s316_s4 }
  0x54   :  { %389 = vmatpush3.bf16.msra.mxu1 %v177_v47  ;;  %p514_p6 = scmp.ne.s32.totalorder %s316_s4, %s513_s25  ;;  %p519_p8 = scmp.lt.s32.totalorder %s513_s25, %s513_s25 }
  0x55   :  { %373 = vmatmul.mubr.bf16.vlgmr.msra.gmra.mxu0 %v82_v26  ;;  %390 = vmatprep.subr.bf16.mxu1 %v547_v0 }
  0x56   :  { %412 = vmatprep.mubr.msk.bf16.mxu0 %vm548_vm0, %v547_v0  ;;  %397 = vmatpush3.bf16.msra.mxu0 %v260_v2  ;;  %p520_p9 = por %p519_p8, %p518_p7 }
  0x57   :  { %398 = vmatprep.subr.bf16.mxu0 %v547_v0 }
  0x58   :  { %391 = vmatpush3.bf16.msra.mxu1 %v176_v50  ;;  %p521_p10 = pnand %p520_p9, %p514_p6 }
  0x5a   :  { %399 = vmatpush3.bf16.msra.mxu0 %v259_v5 }
  0x5b   :  { %400 = vmatprep.subr.bf16.mxu0 %v547_v0 }
  0x5e   :  { %401 = vmatpush3.bf16.msra.mxu0 %v258_v8 }
  0x5f   :  { %402 = vmatprep.subr.bf16.mxu0 %v547_v0 }
  0x62   :  { %403 = vmatpush3.bf16.msra.mxu0 %v257_v11 }
  0x63   :  { %404 = vmatprep.subr.bf16.mxu0 %v547_v0 }
  0x66   :  { %405 = vmatpush3.bf16.msra.mxu0 %v256_v14 }
  0x67   :  { %406 = vmatprep.subr.bf16.mxu0 %v547_v0 }
  0x6a   :  { %407 = vmatpush3.bf16.msra.mxu0 %v255_v17 }
  0x6b   :  { %408 = vmatprep.subr.bf16.mxu0 %v547_v0 }
  0x6e   :  { %409 = vmatpush3.bf16.msra.mxu0 %v254_v20 }
  0x6f   :  { %410 = vmatprep.subr.bf16.mxu0 %v547_v0  ;;  %v328_v0 = vld [vmem:[%s659_s6] ss:$0 sm:$0xff] }
  0x72   :  { %411 = vmatpush3.bf16.msra.mxu0 %v253_v23 }
 0x115   :  { %v148_v52 = vpop.f32.mrf.mxu0 }
 0x116   :  { %v149_v53 = vadd.f32 %v326_v51, %v148_v52 }
 0x117   :  { %v374_v54 = vpop.f32.mrf.mxu0 }
 0x118   :  { %v154_v55 = vsub.f32 0.0, %v149_v53 }
 0x119   :  { %v151_v56 = vpop.f32.mrf.mxu0 }
 0x11a   :  { %v155_v57 = vmul.f32 1.442695, %v154_v55 }
 0x11b   :  { %v375_v58 = vpop.f32.mrf.mxu0 }
 0x11c   :  { %425 = vpow2.f32 %v155_v57 }
 0x129   :  { %v426_v59 = vpop.eup %425 }
 0x12a   :  { %v157_v60 = vadd.f32 1.0, %v426_v59 }
 0x12c   :  { %427 = vrcp.f32 %v157_v60 }
 0x139   :  { %v428_v61 = vpop.eup %427 }
 0x13a   :  { %v159_v62 = vpack.c.bf16 %v428_v61, %v428_v61 }
 0x13c   :  { %393 = vmatmul.mubr.bf16.vlgmr.msra.gmra.mxu1 %v159_v62 }
 0x1fc   :  { %v225_v25 = vpop.f32.mrf.mxu1 }
 0x1fd   :  { %v226_v26 = vadd.f32 %v327_v24, %v225_v25 }
 0x1fe   :  { %v394_v27 = vpop.f32.mrf.mxu1 }
 0x1ff   :  { %v231_v28 = vsub.f32 0.0, %v226_v26 }
 0x200   :  { %v228_v29 = vpop.f32.mrf.mxu1 }
 0x201   :  { %v232_v30 = vmul.f32 1.442695, %v231_v28 }
 0x202   :  { %v395_v31 = vpop.f32.mrf.mxu1 }
 0x203   :  { %429 = vpow2.f32 %v232_v30 }
 0x210   :  { %v430_v32 = vpop.eup %429 }
 0x211   :  { %v234_v33 = vadd.f32 1.0, %v430_v32 }
 0x213   :  { %431 = vrcp.f32 %v234_v33 }
 0x220   :  { %v432_v34 = vpop.eup %431 }
 0x221   :  { %v236_v35 = vpack.c.bf16 %v432_v34, %v432_v34 }
 0x223   :  { %413 = vmatmul.mubr.bf16.vlgmr.msra.gmra.mxu0 %v236_v35 }
 0x2e3   :  { %v302_v36 = vpop.f32.mrf.mxu0 }
 0x2e4   :  { %v303_v37 = vadd.f32 %v328_v0, %v302_v36 }
 0x2e5   :  { %v414_v38 = vpop.f32.mrf.mxu0 }
 0x2e6   :  { %308 = vst [vmem:[#allocation10] sm:$0xff] %v303_v37 }
 0x2e7   :  { %v305_v39 = vpop.f32.mrf.mxu0 }
 0x2e8   :  { %524 = shalt.err (!%p521_p10)
}
 0x2e9   :  { %318 = dma.vmem_to_hbm [thread:$0]  %s316_s4, 128, %s660_s7, [#allocation4]   ;;  %v415_v40 = vpop.f32.mrf.mxu0 }
 0x2ea   :  { %539 = dma.done.wait [#allocation4], 128  }
 0x2eb   :  { %540 = vsyncadd [#allocation4], 4294967168 }
 0x2ec   :  { %322 = vsyncpa [#allocation3], 1 }
 0x2ed   :  { %323 = vsyncpa [#allocation6], 1 }
 0x2ee   :  { %324 = vsyncpa [#allocation9], 1 }
 0x2ef   :  { %325 = vsyncpa [#allocation4], 1 }

</bundles_post_ra>
